<compile_context>
chip_gen: v7x
topology: tpu7x:2x2x1
jax: 0.10.0
libtpu: 0.0.40
codegen_flags: <defaults>
</compile_context>

<pallas_src>
import functools
from typing import NamedTuple, Optional

import jax
import jax.numpy as jnp
from jax.experimental import pallas as pl
from jax.experimental.pallas import tpu as pltpu

_LANE = 128
_SUBLANE = 8


def _round_up(x, m):
    return ((x + m - 1) // m) * m


def _pick_tile(dim_padded, unit, target):
    """Largest multiple of `unit` that divides `dim_padded` and is <= max(target, unit)."""
    n_units = dim_padded // unit
    max_units = max(target // unit, 1)
    best = 1
    for d in range(1, n_units + 1):
        if n_units % d == 0 and d <= max_units:
            best = d
    return best * unit


class NonLinearParams(NamedTuple):
    w_t: jax.Array        # (K_pad, N_pad) lane-dense, pre-transposed weight
    b2d: jax.Array        # (1, N_pad) f32 bias (zeros if bias=False)
    in_features: int
    out_features: int


def prepare_nonlinear_params(weight, bias=None, *, compute_dtype=None):
    """One-time parameter layout prep (transpose + lane padding + optional cast).

    Call once when the module's parameters are created / loaded; the per-call
    forward then reads the already-laid-out weight straight from HBM.
    """
    N, K = weight.shape
    K_pad = _round_up(K, _LANE)
    N_pad = _round_up(N, _LANE)

    w_t = weight.T                      # (K, N): lane-dense MXU RHS layout
    if compute_dtype is not None:
        w_t = w_t.astype(compute_dtype)
    if (K_pad, N_pad) != (K, N):
        w_t = jnp.pad(w_t, ((0, K_pad - K), (0, N_pad - N)))

    if bias is None:
        b = jnp.zeros((N,), jnp.float32)
    else:
        b = bias.astype(jnp.float32)
    if N_pad != N:
        b = jnp.pad(b, (0, N_pad - N))

    return NonLinearParams(w_t, b.reshape(1, N_pad), K, N)


def _nonlinear_kernel(x_ref, w_ref, b_ref, o_ref, *,
                      apply_activation, min_val, max_val):
    # x_ref: (tm, tk)  w_ref: (tk, tn)  b_ref: (1, tn)  o_ref: (tm, tn) f32
    k = pl.program_id(2)

    # Bias folded into the accumulator init; o_ref is resident across the
    # (arbitrary) K axis, so it doubles as the f32 accumulator.
    @pl.when(k == 0)
    def _():
        o_ref[...] = jnp.broadcast_to(b_ref[...], o_ref.shape)

    o_ref[...] += jnp.dot(x_ref[...], w_ref[...],
                          preferred_element_type=jnp.float32)

    if apply_activation:
        @pl.when(k == pl.num_programs(2) - 1)
        def _():
            o_ref[...] = jnp.clip(o_ref[...], min_val, max_val)


def nonlinear_forward(x, params: NonLinearParams, *, apply_activation=True,
                      min_val=0.0, max_val=1.0, compute_dtype=None,
                      tm_target=256, tn_target=512, tk_target=1024):
    """Pallas implementation of NonLinear.forward.

    x:      (B, K) float array
    params: NonLinearParams from prepare_nonlinear_params (cached, reused)
    returns (B, N) array in x.dtype (accumulation is f32)
    """
    B, K = x.shape
    assert K == params.in_features, "weight/input feature mismatch"
    K_pad, N_pad = params.w_t.shape
    N = params.out_features

    B_pad = _round_up(B, _SUBLANE)

    # Tiles are divisors of the granularity-padded dims: no tile-multiple
    # padding, no wasted work on non-power-of-two layer sizes.
    tm = _pick_tile(B_pad, _SUBLANE, tm_target)
    tn = _pick_tile(N_pad, _LANE, tn_target)
    tk = _pick_tile(K_pad, _LANE, tk_target)

    # Guarantee >= 2 parallel (i, j) blocks when possible so both v7x
    # TensorCores get work on small scvi shapes.
    if (B_pad // tm) * (N_pad // tn) == 1:
        if N_pad // _LANE >= 2:
            tn = _pick_tile(N_pad, _LANE, tn // 2)
        elif B_pad // _SUBLANE >= 2:
            tm = _pick_tile(B_pad, _SUBLANE, tm // 2)

    x_c = x if compute_dtype is None else x.astype(compute_dtype)
    if (B_pad, K_pad) != (B, K):
        x_c = jnp.pad(x_c, ((0, B_pad - B), (0, K_pad - K)))

    grid = (B_pad // tm, N_pad // tn, K_pad // tk)

    kernel = functools.partial(
        _nonlinear_kernel,
        apply_activation=apply_activation,
        min_val=min_val,
        max_val=max_val,
    )

    out = pl.pallas_call(
        kernel,
        out_shape=jax.ShapeDtypeStruct((B_pad, N_pad), jnp.float32),
        grid_spec=pltpu.PrefetchScalarGridSpec(
            num_scalar_prefetch=0,
            grid=grid,
            in_specs=[
                pl.BlockSpec((tm, tk), lambda i, j, k: (i, k)),   # x tile
                pl.BlockSpec((tk, tn), lambda i, j, k: (k, j)),   # W^T tile
                pl.BlockSpec((1, tn), lambda i, j, k: (0, j)),    # bias tile
            ],
            out_specs=pl.BlockSpec((tm, tn), lambda i, j, k: (i, j)),
        ),
        compiler_params=pltpu.CompilerParams(
            dimension_semantics=("parallel", "parallel", "arbitrary"),
            vmem_limit_bytes=32 * 1024 * 1024,
        ),
    )(x_c, params.w_t, params.b2d)

    out = out[:B, :N]
    if x.dtype != jnp.float32:
        out = out.astype(x.dtype)
    return out


def nonlinear_apply(x, weight, bias=None, *, apply_activation=True,
                    min_val=0.0, max_val=1.0, compute_dtype=None):
    """One-shot convenience wrapper (prefer caching prepare_nonlinear_params)."""
    params = prepare_nonlinear_params(weight, bias, compute_dtype=compute_dtype)
    return nonlinear_forward(x, params, apply_activation=apply_activation,
                             min_val=min_val, max_val=max_val,
                             compute_dtype=compute_dtype)


# TODO(synk): generic user-supplied torch activation modules are not
# translatable; only identity (activation=None) and Hardtanh-style clamps are
# fused here.


if __name__ == "__main__":
    key = jax.random.PRNGKey(0)

    def check(batch, input_size, output_size, apply_activation, atol, rtol):
        kk = jax.random.fold_in(key, batch * 131071 + input_size * 31 + output_size)
        k_x, k_w, k_b = jax.random.split(kk, 3)

        # Deterministic PyTorch-style nn.Linear init: U(-1/sqrt(in), 1/sqrt(in)).
        bound = 1.0 / (input_size ** 0.5)
        x = jax.random.normal(k_x, (batch, input_size), dtype=jnp.float32)
        weight = jax.random.uniform(k_w, (output_size, input_size),
                                    minval=-bound, maxval=bound,
                                    dtype=jnp.float32)
        bias = jax.random.uniform(k_b, (output_size,),
                                  minval=-bound, maxval=bound,
                                  dtype=jnp.float32)

        # One-time layout prep (transpose + pad), reused across forward calls.
        params = prepare_nonlinear_params(weight, bias)
        out = nonlinear_forward(x, params, apply_activation=apply_activation)
        out = jax.block_until_ready(out)

        ref = x @ weight.T + bias
        if apply_activation:
            ref = jnp.clip(ref, 0.0, 1.0)
        assert out.shape == (batch, output_size)
        assert jnp.allclose(out, ref, atol=atol, rtol=rtol), \
            (batch, input_size, output_size, apply_activation)

    # activation=None (the PyTorch module's default).
    check(8, 32, 16, apply_activation=False, atol=1e-5, rtol=1e-5)
    # Hardtanh(0, 1) activation (scvi VampPrior usage).
    check(8, 32, 16, apply_activation=True, atol=1e-5, rtol=1e-5)
    # Non-multiple-of-128 features: exercises lane-granularity padding, the
    # K reduction loop and the megacore N-split heuristic.
    check(64, 384, 200, apply_activation=True, atol=1e-4, rtol=1e-4)

    print("KERNEL_OK")
</pallas_src>

<mosaic_0001>
module attributes {stable_mosaic.version = 11 : i64} {
  func.func @_nonlinear_kernel(%arg0: i32, %arg1: i32, %arg2: i32, %arg3: memref<8x128xf32, #tpu.memory_space<vmem>>, %arg4: memref<128x128xf32, #tpu.memory_space<vmem>>, %arg5: memref<1x128xf32, #tpu.memory_space<vmem>>, %arg6: memref<8x128xf32, #tpu.memory_space<vmem>>) attributes {dimension_semantics = [#tpu.dimension_semantics<parallel>, #tpu.dimension_semantics<parallel>, #tpu.dimension_semantics<arbitrary>], iteration_bounds = array<i64: 1, 1, 1>, scalar_prefetch = 0 : i64, scratch_operands = 0 : i64, tpu.core_type = #tpu.core_type<tc>, window_params = [{transform_indices = @transform_0, window_bounds = array<i64: 8, 128>}, {transform_indices = @transform_1, window_bounds = array<i64: 128, 128>}, {transform_indices = @transform_2, window_bounds = array<i64: 1, 128>}, {transform_indices = @transform_3, window_bounds = array<i64: 8, 128>}]} {
    %c0_i32 = arith.constant 0 : i32
    %0 = arith.cmpi eq, %arg2, %c0_i32 : i32
    %1 = arith.extui %0 : i1 to i32
    %c0_i32_0 = arith.constant 0 : i32
    %2 = arith.cmpi ne, %1, %c0_i32_0 : i32
    scf.if %2 {
      %c0_8 = arith.constant 0 : index
      %c0_9 = arith.constant 0 : index
      %9 = vector.load %arg5[%c0_8, %c0_9] : memref<1x128xf32, #tpu.memory_space<vmem>>, vector<1x128xf32>
      %10 = vector.shape_cast %9 : vector<1x128xf32> to vector<1x128xf32>
      %11 = vector.broadcast %10 : vector<1x128xf32> to vector<8x128xf32>
      %c0_10 = arith.constant 0 : index
      %c0_11 = arith.constant 0 : index
      %12 = vector.load %arg6[%c0_10, %c0_11] : memref<8x128xf32, #tpu.memory_space<vmem>>, vector<8x128xf32>
      tpu.vector_store %arg6[%c0_10, %c0_11], %11 {strides = array<i32>} : memref<8x128xf32, #tpu.memory_space<vmem>>, vector<8x128xf32>,
    } else {
    }
    %c0 = arith.constant 0 : index
    %c0_1 = arith.constant 0 : index
    %3 = vector.load %arg6[%c0, %c0_1] : memref<8x128xf32, #tpu.memory_space<vmem>>, vector<8x128xf32>
    %c0_2 = arith.constant 0 : index
    %c0_3 = arith.constant 0 : index
    %4 = vector.load %arg3[%c0_2, %c0_3] : memref<8x128xf32, #tpu.memory_space<vmem>>, vector<8x128xf32>
    %c0_4 = arith.constant 0 : index
    %c0_5 = arith.constant 0 : index
    %5 = vector.load %arg4[%c0_4, %c0_5] : memref<128x128xf32, #tpu.memory_space<vmem>>, vector<128x128xf32>
    %cst = arith.constant dense<0.000000e+00> : vector<8x128xf32>
    %6 = tpu.matmul %4, %5, %cst {dimension_numbers = #tpu.dot_dimension_numbers<[1], [0], [0], [1], [0, 0, 1, 1], [], []>} : vector<8x128xf32>, vector<128x128xf32>, vector<8x128xf32> -> vector<8x128xf32>
    %7 = arith.addf %3, %6 : vector<8x128xf32>
    %c0_6 = arith.constant 0 : index
    %c0_7 = arith.constant 0 : index
    %8 = vector.load %arg6[%c0_6, %c0_7] : memref<8x128xf32, #tpu.memory_space<vmem>>, vector<8x128xf32>
    tpu.vector_store %arg6[%c0_6, %c0_7], %7 {strides = array<i32>} : memref<8x128xf32, #tpu.memory_space<vmem>>, vector<8x128xf32>,
    return
  }
  func.func @transform_0(%arg0: i32, %arg1: i32, %arg2: i32) -> (i32, i32) {
    %c0_i32 = arith.constant 0 : i32
    return %arg0, %arg2 : i32, i32
  }
  func.func @transform_1(%arg0: i32, %arg1: i32, %arg2: i32) -> (i32, i32) {
    %c0_i32 = arith.constant 0 : i32
    return %arg2, %arg1 : i32, i32
  }
  func.func @transform_2(%arg0: i32, %arg1: i32, %arg2: i32) -> (i32, i32) {
    %c0_i32 = arith.constant 0 : i32
    %c0_i32_0 = arith.constant 0 : i32
    return %c0_i32, %arg1 : i32, i32
  }
  func.func @transform_3(%arg0: i32, %arg1: i32, %arg2: i32) -> (i32, i32) {
    %c0_i32 = arith.constant 0 : i32
    return %arg0, %arg1 : i32, i32
  }
}

</mosaic_0001>

<bundles_post_ra>
// kernel: tpu_custom_call.1
= control target key start
LH: loop header
LB: loop body
LE: loop exit
PB: predicated region body
PF: predicated region fallthrough
CT: control target
= control target key end

     0   :  { %8 = vsyncpa [#allocation3], 0  ;;  %s390_s0 = inlined_call_operand.hbm [shape: f32[8,128], index: 0, kind: input, shape index: {}]   ;;  %s391_s1 = inlined_call_operand.hbm [shape: f32[128,128], index: 1, kind: input, shape index: {}]   ;;  %s392_s2 = inlined_call_operand.vmem [shape: f32[1,128], index: 2, kind: input, shape index: {}]   ;;  %s393_s3 = inlined_call_operand.hbm [shape: f32[8,128], index: 3, kind: output, shape index: {}]  }
   0x1   :  { %9 = vsyncpa [#allocation6], 0 }
   0x2   :  { %10 = vsyncpa [#allocation4], 0  ;;  %s316_s12 = smov [#allocation2]   ;;  %s317_s14 = smov [#allocation5]  }
   0x3   :  { %s17_s13 = sshll.u32 %s316_s12, 4  ;;  %s26_s15 = sshll.u32 %s317_s14, 4  ;;  %s18_s13 = int_to_ptr.vmem [resolvable:$true] %s17_s13  ;;  %s344_s15 = int_to_ptr.vmem [resolvable:$true] %s26_s15 }
   0x4   :  { %s244_s18 = scalar_lea.hbm %s390_s0, 128 }
   0x5   :  { %p245_p0 = scmp.ne.s32.totalorder %s390_s0, %s244_s18  ;;  %p248_p1 = scmp.lt.u32.totalorder %s244_s18, %s390_s0 }
   0x7   :  { %p250_p2 = pnand %p248_p1, %p245_p0 }
   0x9   :  { %253 = shalt.err (!%p250_p2)
}
   0xa   :  { %s254_s23 = scalar_lea.vmem %s18_s13, 128  ;;  %p259_p4 = scmp.lt.s32.totalorder %s18_s13, %s18_s13 }
   0xb   :  { %p255_p3 = scmp.ne.s32.totalorder %s18_s13, %s254_s23  ;;  %p260_p5 = scmp.lt.s32.totalorder %s254_s23, %s254_s23 }
   0xd   :  { %p261_p6 = por %p260_p5, %p259_p4 }
   0xf   :  { %p262_p7 = pnand %p261_p6, %p255_p3 }
  0x11   :  { %265 = shalt.err (!%p262_p7)
}
  0x12   :  { %20 = dma.hbm_to_vmem [thread:$0]  %s390_s0, 128, %s18_s13, [#allocation3]  }
  0x13   :  { %s266_s28 = scalar_lea.hbm %s391_s1, 2048 }
  0x14   :  { %p267_p8 = scmp.ne.s32.totalorder %s391_s1, %s266_s28  ;;  %p270_p9 = scmp.lt.u32.totalorder %s266_s28, %s391_s1 }
  0x16   :  { %p272_p10 = pnand %p270_p9, %p267_p8 }
  0x18   :  { %275 = shalt.err (!%p272_p10)
}
  0x19   :  { %s276_s6 = scalar_lea.vmem %s344_s15, 2048  ;;  %p281_p12 = scmp.lt.s32.totalorder %s344_s15, %s344_s15 }
  0x1a   :  { %p277_p11 = scmp.ne.s32.totalorder %s344_s15, %s276_s6  ;;  %p282_p13 = scmp.lt.s32.totalorder %s276_s6, %s276_s6 }
  0x1c   :  { %p283_p0 = por %p282_p13, %p281_p12 }
  0x1e   :  { %p284_p1 = pnand %p283_p0, %p277_p11 }
  0x20   :  { %287 = shalt.err (!%p284_p1)
}
  0x21   :  { %s318_s0 = smov 128   ;;  %s319_s7 = smov 8  }
  0x22   :  { %32 = dma.hbm_to_vmem [thread:$0]  %s391_s1, 2048, %s344_s15, [#allocation6], %s318_s0, %s318_s0, %s319_s7  }
  0x23   :  { %310 = dma.done.wait [#allocation3], 128  }
  0x24   :  { %311 = vsyncadd [#allocation3], 4294967168 }
  0x25   :  { %312 = dma.done.wait [#allocation6], 2048  }
  0x26   :  { %313 = vsyncadd [#allocation6], 4294965248  ;;  %v320_v0 = vmov 0.0|0.0   ;;  %vm321_vm0 = vmmov 0   ;;  %v322_v1 = vmov 0.0   ;;  %v55_v2 = vld [vmem:[#allocation5] sm:$0xff] }
  0x27   :  { %212 = vmatprep.subr.bf16.mxu0 %v320_v0  ;;  %209 = vmatprep.mubr.msk.f32.mxu0 %vm321_vm0, %v322_v1  ;;  %v56_v3 = vld [vmem:[#allocation5 + $0x8] sm:$0xff]  ;;  %v57_v4 = vld [vmem:[#allocation5 + $0x10] sm:$0xff]  ;;  %v58_v6 = vld [vmem:[#allocation5 + $0x18] sm:$0xff]  ;;  %s323_s11 = smov [#allocation7]  }
  0x28   :  { %v213_v5 = vpack.c.bf16 %v56_v3, %v55_v2  ;;  %v216_v7 = vpack.c.bf16 %v58_v6, %v57_v4  ;;  %v59_v8 = vld [vmem:[#allocation5 + $0x20] sm:$0xff]  ;;  %v60_v9 = vld [vmem:[#allocation5 + $0x28] sm:$0xff]  ;;  %v61_v11 = vld [vmem:[#allocation5 + $0x30] sm:$0xff]  ;;  %s149_s12 = sshll.u32 %s323_s11, 4  ;;  %s150_s12 = int_to_ptr.vmem [resolvable:$true] %s149_s12 }
  0x29   :  { %v219_v10 = vpack.c.bf16 %v60_v9, %v59_v8  ;;  %v62_v12 = vld [vmem:[#allocation5 + $0x38] sm:$0xff]  ;;  %v63_v14 = vld [vmem:[#allocation5 + $0x40] sm:$0xff]  ;;  %v64_v15 = vld [vmem:[#allocation5 + $0x48] sm:$0xff]  ;;  %s288_s13 = scalar_lea.vmem %s150_s12, 128  ;;  %p293_p3 = scmp.lt.s32.totalorder %s150_s12, %s150_s12 }
  0x2a   :  { %214 = vmatpush3.bf16.msra.mxu0 %v213_v5  ;;  %v222_v13 = vpack.c.bf16 %v62_v12, %v61_v11  ;;  %v225_v16 = vpack.c.bf16 %v64_v15, %v63_v14  ;;  %v65_v17 = vld [vmem:[#allocation5 + $0x50] sm:$0xff]  ;;  %v66_v18 = vld [vmem:[#allocation5 + $0x58] sm:$0xff]  ;;  %v67_v20 = vld [vmem:[#allocation5 + $0x60] sm:$0xff]  ;;  %p289_p2 = scmp.ne.s32.totalorder %s150_s12, %s288_s13  ;;  %p294_p4 = scmp.lt.s32.totalorder %s288_s13, %s288_s13 }
  0x2b   :  { %215 = vmatprep.subr.bf16.mxu0 %v320_v0  ;;  %v228_v19 = vpack.c.bf16 %v66_v18, %v65_v17  ;;  %v68_v21 = vld [vmem:[#allocation5 + $0x68] sm:$0xff]  ;;  %v69_v23 = vld [vmem:[#allocation5 + $0x70] sm:$0xff]  ;;  %v70_v24 = vld [vmem:[#allocation5 + $0x78] sm:$0xff] }
  0x2c   :  { %v231_v22 = vpack.c.bf16 %v68_v21, %v67_v20  ;;  %v234_v25 = vpack.c.bf16 %v70_v24, %v69_v23  ;;  %v54_v26 = vld [vmem:[#allocation2] sm:$0xff]  ;;  %p295_p5 = por %p294_p4, %p293_p3 }
  0x2d   :  { %v159_v27 = vld [vmem:[%s392_s2] ss:$0 sm:$0xff] }
  0x2e   :  { %217 = vmatpush3.bf16.msra.mxu0 %v216_v7  ;;  %p296_p6 = pnand %p295_p5, %p289_p2 }
  0x2f   :  { %218 = vmatprep.subr.bf16.mxu0 %v320_v0 }
  0x32   :  { %220 = vmatpush3.bf16.msra.mxu0 %v219_v10 }
  0x33   :  { %221 = vmatprep.subr.bf16.mxu0 %v320_v0 }
  0x36   :  { %223 = vmatpush3.bf16.msra.mxu0 %v222_v13 }
  0x37   :  { %224 = vmatprep.subr.bf16.mxu0 %v320_v0 }
  0x3a   :  { %226 = vmatpush3.bf16.msra.mxu0 %v225_v16 }
  0x3b   :  { %227 = vmatprep.subr.bf16.mxu0 %v320_v0 }
  0x3e   :  { %229 = vmatpush3.bf16.msra.mxu0 %v228_v19 }
  0x3f   :  { %230 = vmatprep.subr.bf16.mxu0 %v320_v0 }
  0x42   :  { %232 = vmatpush3.bf16.msra.mxu0 %v231_v22 }
  0x43   :  { %233 = vmatprep.subr.bf16.mxu0 %v320_v0 }
  0x46   :  { %235 = vmatpush3.bf16.msra.mxu0 %v234_v25 }
  0x49   :  { %210 = vmatmul.mubr.f32.vlgmr.msra.gmra.mrb[0].mxu0 %v54_v26 }
 0x11c   :  { %v137_v28 = vpop.f32.mrb[0].mxu0 }
 0x11d   :  { %v141_v29 = vadd.f32 %v159_v27, %v137_v28  ;;  %v211_v30 = vpop.f32.mrb[1].mxu0 }
 0x11f   :  { %142 = vst [vmem:[#allocation7] sm:$0xff] %v141_v29 }
 0x120   :  { %299 = shalt.err (!%p296_p6)
}
 0x121   :  { %s300_s16 = scalar_lea.hbm %s393_s3, 128 }
 0x122   :  { %p301_p7 = scmp.ne.s32.totalorder %s393_s3, %s300_s16  ;;  %p304_p8 = scmp.lt.u32.totalorder %s300_s16, %s393_s3 }
 0x124   :  { %p306_p9 = pnand %p304_p8, %p301_p7 }
 0x126   :  { %309 = shalt.err (!%p306_p9)
}
 0x127   :  { %152 = dma.vmem_to_hbm [thread:$0]  %s150_s12, 128, %s393_s3, [#allocation4]  }
 0x128   :  { %314 = dma.done.wait [#allocation4], 128  }
 0x129   :  { %315 = vsyncadd [#allocation4], 4294967168 }
 0x12a   :  { %156 = vsyncpa [#allocation3], 1 }
 0x12b   :  { %157 = vsyncpa [#allocation6], 1 }
 0x12c   :  { %158 = vsyncpa [#allocation4], 1 }

</bundles_post_ra>
